<compile_context>
chip_gen: v7x
topology: tpu7x:2x2x1
jax: 0.10.0
libtpu: 0.0.40
codegen_flags: <defaults>
</compile_context>

<pallas_src>
import jax
import jax.numpy as jnp
from jax.experimental import pallas as pl
from jax.experimental.pallas import tpu as pltpu


def _round_up(x: int, m: int) -> int:
    return -(-x // m) * m


def dqn_mlp_kernel(x_ref, w1_ref, b1_ref, w2_ref, b2_ref, out_ref):
    # fc1: (tb, D) @ (D, H) on the MXU with f32 accumulation; bias + ReLU on
    # the VPU in f32.
    h = jnp.dot(x_ref[...], w1_ref[...], preferred_element_type=jnp.float32)
    h = jnp.maximum(h + b1_ref[...], 0.0)
    # fc2: cast only the matmul operand to the weight dtype (bf16 is native on
    # the MXU of all generations); accumulate and add the bias in f32.
    a = jnp.dot(h.astype(w2_ref.dtype), w2_ref[...],
                preferred_element_type=jnp.float32)
    out_ref[...] = (a + b2_ref[...]).astype(out_ref.dtype)


def _choose_tile(B: int, block_b: int) -> int:
    """Pick the batch tile size (rows per grid step)."""
    block_b = max(16, _round_up(int(block_b), 16))
    if B >= 2048:
        # Large batch: at least two (roughly balanced) grid steps so both
        # TensorCores get work on v7x; cap by block_b for VMEM.
        return min(block_b, _round_up(pl.cdiv(B, 2), 16))
    if B <= block_b:
        # Small batch: one full-extent block (always a legal block shape).
        return B
    return block_b


def dqn_forward(x, w1, b1, w2, b2, *, block_b=4096,
                compute_dtype=jnp.bfloat16, out_dtype=jnp.float32):
    """Fused fc1 -> ReLU -> fc2 forward pass in one Pallas kernel.

    x  : (B, input_dims)
    w1 : (input_dims, 32)        (PyTorch fc1.weight.T)
    b1 : (1, 32)
    w2 : (32, n_actions)         (PyTorch fc2.weight.T)
    b2 : (1, n_actions)
    returns: (B, n_actions) in out_dtype
    """
    B, D = x.shape
    H = w1.shape[1]
    A = w2.shape[1]

    tb = _choose_tile(B, block_b)
    num_tiles = pl.cdiv(B, tb)

    # Matmul operands in compute_dtype (bf16 default halves x's HBM traffic;
    # ideally the producer already emits bf16 so this cast fuses upstream).
    x = x.astype(compute_dtype)
    w1 = w1.astype(compute_dtype)
    w2 = w2.astype(compute_dtype)
    b1 = b1.astype(jnp.float32)
    b2 = b2.astype(jnp.float32)

    out = pl.pallas_call(
        dqn_mlp_kernel,
        out_shape=jax.ShapeDtypeStruct((B, A), out_dtype),
        grid=(num_tiles,),
        in_specs=[
            pl.BlockSpec((tb, D), lambda i: (i, 0)),   # x: streamed per tile
            pl.BlockSpec((D, H), lambda i: (0, 0)),    # w1: resident in VMEM
            pl.BlockSpec((1, H), lambda i: (0, 0)),    # b1: resident
            pl.BlockSpec((H, A), lambda i: (0, 0)),    # w2: resident (unpadded)
            pl.BlockSpec((1, A), lambda i: (0, 0)),    # b2: resident (unpadded)
        ],
        # Unpadded lane dim: n_actions equals the full array dim, so this is a
        # legal block; ragged tail rows are simply not written back.
        out_specs=pl.BlockSpec((tb, A), lambda i: (i, 0)),
        compiler_params=pltpu.CompilerParams(
            # Batch tiles are independent -> shard grid steps across both
            # TensorCores on v7x; no-op on v5e/v6e.
            dimension_semantics=("parallel",),
            # Lane-padded VMEM for tb~4-8k tiles exceeds v5e's 16 MiB scoped
            # default; 40 MiB is comfortably within physical VMEM everywhere.
            vmem_limit_bytes=40 * 1024 * 1024,
        ),
    )(x, w1, b1, w2, b2)

    return out


if __name__ == "__main__":
    # Module hyperparameters implied by DeepQNetwork.__init__
    input_dims = 16   # input_dims argument
    hidden = 32       # fc1 output size (hard-coded in the module)
    n_actions = 4     # n_actions argument

    key = jax.random.PRNGKey(0)
    k_x, k_w1, k_b1, k_w2, k_b2, k_x2 = jax.random.split(key, 6)

    # Deterministic parameter init (uniform, roughly PyTorch's default
    # Kaiming-uniform fan-in scaling for nn.Linear).
    bound1 = 1.0 / (input_dims ** 0.5)
    bound2 = 1.0 / (hidden ** 0.5)
    w1 = jax.random.uniform(k_w1, (input_dims, hidden), jnp.float32, -bound1, bound1)
    b1 = jax.random.uniform(k_b1, (1, hidden), jnp.float32, -bound1, bound1)
    w2 = jax.random.uniform(k_w2, (hidden, n_actions), jnp.float32, -bound2, bound2)
    b2 = jax.random.uniform(k_b2, (1, n_actions), jnp.float32, -bound2, bound2)

    def ref_fn(xx):
        return jnp.maximum(xx @ w1 + b1, 0.0) @ w2 + b2

    # (1) Tiny inference batch (single full-extent block), f32 compute, tight check.
    batch = 8
    x = jax.random.normal(k_x, (batch, input_dims), jnp.float32)
    y = jax.block_until_ready(
        dqn_forward(x, w1, b1, w2, b2, compute_dtype=jnp.float32))
    assert y.shape == (batch, n_actions)
    assert jnp.allclose(y, ref_fn(x), atol=1e-5, rtol=1e-5)

    # (2) Replay-style batch: multiple grid steps with a ragged last tile
    #     (256 = 5*48 + 16) -> exercises the cdiv grid / no-pad path; exact in f32.
    batch2 = 256
    x2 = jax.random.normal(k_x2, (batch2, input_dims), jnp.float32)
    y2 = jax.block_until_ready(
        dqn_forward(x2, w1, b1, w2, b2, block_b=48, compute_dtype=jnp.float32))
    assert y2.shape == (batch2, n_actions)
    assert jnp.allclose(y2, ref_fn(x2), atol=1e-5, rtol=1e-5)

    # (3) Default path: bf16 matmul operands (f32 accumulation) -> looser
    #     tolerance against the f32 reference.
    y2_bf16 = jax.block_until_ready(dqn_forward(x2, w1, b1, w2, b2))
    assert y2_bf16.shape == (batch2, n_actions)
    assert jnp.allclose(y2_bf16, ref_fn(x2), atol=5e-2, rtol=5e-2)

    print("KERNEL_OK")
</pallas_src>

<mosaic_0001>
module attributes {stable_mosaic.version = 11 : i64} {
  func.func @dqn_mlp_kernel(%arg0: i32, %arg1: memref<8x16xf32, #tpu.memory_space<vmem>>, %arg2: memref<16x32xf32, #tpu.memory_space<vmem>>, %arg3: memref<1x32xf32, #tpu.memory_space<vmem>>, %arg4: memref<32x4xf32, #tpu.memory_space<vmem>>, %arg5: memref<1x4xf32, #tpu.memory_space<vmem>>, %arg6: memref<8x4xf32, #tpu.memory_space<vmem>>) attributes {dimension_semantics = [#tpu.dimension_semantics<parallel>], iteration_bounds = array<i64: 1>, scalar_prefetch = 0 : i64, scratch_operands = 0 : i64, tpu.core_type = #tpu.core_type<tc>, window_params = [{transform_indices = @transform_0, window_bounds = array<i64: 8, 16>}, {pipeline_mode = #tpu.pipeline_mode<synchronous>, transform_indices = @transform_1, window_bounds = array<i64: 16, 32>}, {pipeline_mode = #tpu.pipeline_mode<synchronous>, transform_indices = @transform_2, window_bounds = array<i64: 1, 32>}, {pipeline_mode = #tpu.pipeline_mode<synchronous>, transform_indices = @transform_3, window_bounds = array<i64: 32, 4>}, {pipeline_mode = #tpu.pipeline_mode<synchronous>, transform_indices = @transform_4, window_bounds = array<i64: 1, 4>}, {transform_indices = @transform_5, window_bounds = array<i64: 8, 4>}]} {
    %c0 = arith.constant 0 : index
    %c0_0 = arith.constant 0 : index
    %0 = vector.load %arg1[%c0, %c0_0] : memref<8x16xf32, #tpu.memory_space<vmem>>, vector<8x16xf32>
    %c0_1 = arith.constant 0 : index
    %c0_2 = arith.constant 0 : index
    %1 = vector.load %arg2[%c0_1, %c0_2] : memref<16x32xf32, #tpu.memory_space<vmem>>, vector<16x32xf32>
    %cst = arith.constant dense<0.000000e+00> : vector<8x32xf32>
    %2 = tpu.matmul %0, %1, %cst {dimension_numbers = #tpu.dot_dimension_numbers<[1], [0], [0], [1], [0, 0, 1, 1], [], []>} : vector<8x16xf32>, vector<16x32xf32>, vector<8x32xf32> -> vector<8x32xf32>
    %c0_3 = arith.constant 0 : index
    %c0_4 = arith.constant 0 : index
    %3 = vector.load %arg3[%c0_3, %c0_4] : memref<1x32xf32, #tpu.memory_space<vmem>>, vector<1x32xf32>
    %4 = vector.broadcast %3 : vector<1x32xf32> to vector<8x32xf32>
    %5 = arith.addf %2, %4 : vector<8x32xf32>
    %cst_5 = arith.constant 0.000000e+00 : f32
    %6 = vector.broadcast %cst_5 : f32 to vector<8x32xf32>
    %7 = arith.maximumf %5, %6 : vector<8x32xf32>
    %c0_6 = arith.constant 0 : index
    %c0_7 = arith.constant 0 : index
    %8 = vector.load %arg4[%c0_6, %c0_7] : memref<32x4xf32, #tpu.memory_space<vmem>>, vector<32x4xf32>
    %cst_8 = arith.constant dense<0.000000e+00> : vector<8x4xf32>
    %9 = tpu.matmul %7, %8, %cst_8 {dimension_numbers = #tpu.dot_dimension_numbers<[1], [0], [0], [1], [0, 0, 1, 1], [], []>} : vector<8x32xf32>, vector<32x4xf32>, vector<8x4xf32> -> vector<8x4xf32>
    %c0_9 = arith.constant 0 : index
    %c0_10 = arith.constant 0 : index
    %10 = vector.load %arg5[%c0_9, %c0_10] : memref<1x4xf32, #tpu.memory_space<vmem>>, vector<1x4xf32>
    %11 = vector.broadcast %10 : vector<1x4xf32> to vector<8x4xf32>
    %12 = arith.addf %9, %11 : vector<8x4xf32>
    %c0_11 = arith.constant 0 : index
    %c0_12 = arith.constant 0 : index
    %13 = vector.load %arg6[%c0_11, %c0_12] : memref<8x4xf32, #tpu.memory_space<vmem>>, vector<8x4xf32>
    tpu.vector_store %arg6[%c0_11, %c0_12], %12 {strides = array<i32>} : memref<8x4xf32, #tpu.memory_space<vmem>>, vector<8x4xf32>,
    return
  }
  func.func @transform_0(%arg0: i32) -> (i32, i32) {
    %c0_i32 = arith.constant 0 : i32
    %c0_i32_0 = arith.constant 0 : i32
    return %arg0, %c0_i32 : i32, i32
  }
  func.func @transform_1(%arg0: i32) -> (i32, i32) {
    %c0_i32 = arith.constant 0 : i32
    %c0_i32_0 = arith.constant 0 : i32
    %c0_i32_1 = arith.constant 0 : i32
    return %c0_i32, %c0_i32_0 : i32, i32
  }
  func.func @transform_2(%arg0: i32) -> (i32, i32) {
    %c0_i32 = arith.constant 0 : i32
    %c0_i32_0 = arith.constant 0 : i32
    %c0_i32_1 = arith.constant 0 : i32
    return %c0_i32, %c0_i32_0 : i32, i32
  }
  func.func @transform_3(%arg0: i32) -> (i32, i32) {
    %c0_i32 = arith.constant 0 : i32
    %c0_i32_0 = arith.constant 0 : i32
    %c0_i32_1 = arith.constant 0 : i32
    return %c0_i32, %c0_i32_0 : i32, i32
  }
  func.func @transform_4(%arg0: i32) -> (i32, i32) {
    %c0_i32 = arith.constant 0 : i32
    %c0_i32_0 = arith.constant 0 : i32
    %c0_i32_1 = arith.constant 0 : i32
    return %c0_i32, %c0_i32_0 : i32, i32
  }
  func.func @transform_5(%arg0: i32) -> (i32, i32) {
    %c0_i32 = arith.constant 0 : i32
    %c0_i32_0 = arith.constant 0 : i32
    return %arg0, %c0_i32 : i32, i32
  }
}

</mosaic_0001>

<bundles_post_ra>
// kernel: tpu_custom_call.1
= control target key start
LH: loop header
LB: loop body
LE: loop exit
PB: predicated region body
PF: predicated region fallthrough
CT: control target
= control target key end

     0   :  { %v238_v0 = vmov 0.0|0.0   ;;  %vm239_vm0 = vmmov 0   ;;  %v240_v3 = vmov 0.0   ;;  %vm30_vm1 = vcmask 130048   ;;  %s301_s1 = inlined_call_operand.vmem [shape: f32[16,32], index: 1, kind: input, shape index: {}]   ;;  %s302_s3 = inlined_call_operand.vmem [shape: f32[32,4], index: 3, kind: input, shape index: {}]   ;;  %s303_s0 = inlined_call_operand.vmem [shape: f32[8,16], index: 0, kind: input, shape index: {}]   ;;  %s304_s2 = inlined_call_operand.vmem [shape: f32[1,32], index: 2, kind: input, shape index: {}]   ;;  %s305_s4 = inlined_call_operand.vmem [shape: f32[1,4], index: 4, kind: input, shape index: {}]   ;;  %s306_s5 = inlined_call_operand.vmem [shape: f32[8,4], index: 5, kind: output, shape index: {}]  }
   0x1   :  { %226 = vmatprep.subr.bf16.mxu0 %v238_v0  ;;  %v21_v1 = vld [vmem:[%s301_s1] sm:$0xff]  ;;  %v22_v2 = vld [vmem:[%s301_s1 + $0x8] sm:$0xff]  ;;  %212 = vmatprep.mubr.msk.f32.mxu0 %vm239_vm0, %v240_v3  ;;  %v107_v9 = vld [vmem:[%s302_s3 + $0x10] sm:$0xff]  ;;  %vm116_vm2 = vcmask 261120   ;;  %vm190_vm3 = vcmask 31744  }
   0x2   :  { %v227_v4 = vpack.c.bf16 %v22_v2, %v21_v1  ;;  %229 = vmatprep.subr.bf16.mxu1 %v238_v0  ;;  %v105_v5 = vld [vmem:[%s302_s3] sm:$0xff]  ;;  %v106_v6 = vld [vmem:[%s302_s3 + $0x8] sm:$0xff]  ;;  %223 = vmatprep.mubr.msk.f32.mxu1 %vm239_vm0, %v240_v3  ;;  %v108_v10 = vld [vmem:[%s302_s3 + $0x18] sm:$0xff] }
   0x3   :  { %v230_v7 = vpack.c.bf16 %v106_v6, %v105_v5  ;;  %v20_v8 = vld [vmem:[%s303_s0] sm:$0xff]  ;;  %v233_v11 = vpack.c.bf16 %v108_v10, %v107_v9 }
   0x4   :  { %228 = vmatpush3.bf16.msra.mxu0 %v227_v4  ;;  %v196_v12 = vld [vmem:[%s304_s2] ss:$0 sm:$0xff] }
   0x5   :  { %231 = vmatpush3.bf16.msra.mxu1 %v230_v7  ;;  %v198_v17 = vld [vmem:[%s305_s4] ss:$0 sm:$0xff] }
   0x6   :  { %232 = vmatprep.subr.bf16.mxu1 %v238_v0 }
   0x7   :  { %213 = vmatmul.mubr.msk.f32.vlgmr.msra.gmra.mrb[0].mxu0 %vm30_vm1, %v20_v8 }
   0x9   :  { %234 = vmatpush3.bf16.msra.mxu1 %v233_v11 }
  0xda   :  { %v100_v13 = vpop.f32.mrb[0].mxu0 }
  0xdb   :  { %v101_v14 = vadd.f32 %v196_v12, %v100_v13  ;;  %v214_v15 = vpop.f32.mrb[1].mxu0 }
  0xdd   :  { %v104_v16 = vmax.f32 %v101_v14, 0.0 }
  0xdf   :  { %224 = vmatmul.mubr.msk.f32.vlgmr.msra.gmra.mrb[0].mxu1 %vm116_vm2, %v104_v16 }
 0x1b2   :  { %v186_v18 = vpop.f32.mrb[0].mxu1 }
 0x1b3   :  { %v187_v19 = vadd.f32 %v198_v17, %v186_v18  ;;  %v225_v20 = vpop.f32.mrb[1].mxu1 }
 0x1b5   :  { %191 = vst.msk [vmem:[%s306_s5] sm:$0xff] %vm190_vm3, %v187_v19 }

</bundles_post_ra>
